<compile_context>
chip_gen: v7x
topology: tpu7x:2x2x1
jax: 0.10.0
libtpu: 0.0.40
codegen_flags: <defaults>
</compile_context>

<pallas_src>
import jax
import jax.numpy as jnp
from jax.experimental import pallas as pl
from jax.experimental.pallas import tpu as pltpu


def _round_up(x: int, m: int) -> int:
    return (x + m - 1) // m * m


def _cdiv(x: int, m: int) -> int:
    return (x + m - 1) // m


def lora_kernel(x_ref, a_ref, b_ref, o_ref, xa_ref):
    # x_ref: [tm, in_features]   a_ref: [in_features, rank]
    # b_ref: [rank, tn]          o_ref: [tm, tn]
    # xa_ref: [tm, rank] f32 scratch, persistent across grid steps.
    #
    # Grid = (grid_m, grid_n) with the output-column axis innermost and
    # "arbitrary": the [tm, rank] intermediate is computed once per M tile
    # (at j == 0) and reused for every column tile of the same M tile.
    @pl.when(pl.program_id(1) == 0)
    def _():
        xa_ref[...] = jnp.dot(x_ref[...], a_ref[...],
                              preferred_element_type=jnp.float32)

    xa = xa_ref[...].astype(b_ref.dtype)
    o_ref[...] = jnp.dot(xa, b_ref[...],
                         preferred_element_type=jnp.float32).astype(o_ref.dtype)


def _vmem_capacity_bytes() -> int:
    try:
        return int(pltpu.get_tpu_info().vmem_capacity_bytes)
    except Exception:
        return 64 << 20   # conservative: v7x has 64 MiB per TensorCore


def _min_sublanes(dtype) -> int:
    # Minimum second-minor block multiple: 8 (f32), 16 (bf16), 32 (int8/fp8).
    return max(8, 32 // max(1, jnp.dtype(dtype).itemsize))


def _derive_tiles(M, in_f, out_p, rank, itemsize, sublane, budget):
    """Pick (tm, tn): M-row tile and output-column tile that fit `budget`."""
    m_cap = _round_up(max(M, 1), sublane)

    def fits(tm, tn):
        use = (2 * tm * in_f        # x tile, double-buffered
               + 2 * tm * tn        # out tile, double-buffered
               + 2 * in_f * rank    # A (worst case: 2 buffers)
               + 2 * rank * tn      # B (worst case: 2 buffers)
               ) * itemsize
        use += tm * rank * 4        # xa scratch (f32)
        return use <= budget

    # Candidate M tiles, largest first: mem-bound kernels want 512-1024 rows
    # (tile 256 -> ~63% of HBM roofline, 512-1024 -> ~85%).
    tm_cands = []
    for t in (1024, 768, 512, 384, 256, 128, 64, 32, 16, 8):
        t = max(sublane, min(_round_up(t, sublane), m_cap))
        if t not in tm_cands:
            tm_cands.append(t)

    # 1) Keep the full output width (single inner step, B fully resident).
    tm_full = next((t for t in tm_cands if fits(t, out_p)), None)
    if tm_full is not None and (tm_full >= min(512, m_cap) or out_p <= 1024):
        return tm_full, out_p

    # 2) Tile output columns to recover a large M tile (needed on v7x's
    #    64 MiB VMEM for very wide out_features).  x is not re-read per tile.
    if out_p >= 256:
        for tm in tm_cands:
            fixed = (2 * tm * in_f + 2 * in_f * rank) * itemsize + tm * rank * 4
            per_col = (2 * tm + 2 * rank) * itemsize
            cols = max(budget - fixed, 0) // per_col
            tn = min((cols // 128) * 128, (out_p // 128) * 128)
            if tn >= 128 and fits(tm, tn):
                return tm, int(tn)

    # 3) Fall back to whatever fits at full width (or the smallest tiles for
    #    pathological shapes).
    if tm_full is not None:
        return tm_full, out_p
    return tm_cands[-1], out_p


def _lora_pallas(x2d, A, B_p, *, single_buffer_resident, tm, tn, grid, out_p,
                 in_features, rank, out_dtype, vmem_limit, flops,
                 bytes_accessed, b_resident):
    M = x2d.shape[0]

    def resident_spec(shape, index_map):
        # Constant-index operands don't need a second pipeline buffer.
        if single_buffer_resident:
            try:
                return pl.BlockSpec(shape, index_map,
                                    pipeline_mode=pl.Buffered(1))
            except Exception:
                pass
        return pl.BlockSpec(shape, index_map)

    x_spec = pl.BlockSpec((tm, in_features), lambda i, j: (i, 0))
    a_spec = resident_spec((in_features, rank), lambda i, j: (0, 0))
    if b_resident:
        b_spec = resident_spec((rank, tn), lambda i, j: (0, 0))
    else:
        b_spec = pl.BlockSpec((rank, tn), lambda i, j: (0, j))
    o_spec = pl.BlockSpec((tm, tn), lambda i, j: (i, j))

    return pl.pallas_call(
        lora_kernel,
        out_shape=jax.ShapeDtypeStruct((M, out_p), out_dtype),
        grid_spec=pltpu.PrefetchScalarGridSpec(
            num_scalar_prefetch=0,
            grid=grid,
            in_specs=[x_spec, a_spec, b_spec],
            out_specs=o_spec,
            scratch_shapes=[pltpu.VMEM((tm, rank), jnp.float32)],
        ),
        compiler_params=pltpu.CompilerParams(
            dimension_semantics=("parallel", "arbitrary"),
            vmem_limit_bytes=int(vmem_limit),
        ),
        cost_estimate=pl.CostEstimate(
            flops=int(flops), transcendentals=0,
            bytes_accessed=int(bytes_accessed)),
    )(x2d, A, B_p)


def lora_forward(x, A, B, *, tm=None, tn=None, use_pallas=None):
    """LoRA forward: x @ A @ B, x: [..., in_features] -> [..., out_features]."""
    in_features, rank = A.shape
    rank_b, out_features = B.shape
    assert rank == rank_b and x.shape[-1] == in_features

    lead_shape = x.shape[:-1]
    M = 1
    for d in lead_shape:
        M *= d
    itemsize = jnp.dtype(x.dtype).itemsize

    # Tiny problems: fixed pallas_call overhead dominates -> plain XLA.
    total_bytes = itemsize * (M * in_features + in_features * rank
                              + rank * out_features + M * out_features)
    if use_pallas is None:
        use_pallas = total_bytes >= (256 << 10)
    if not use_pallas or M == 0 or rank == 0 or out_features == 0:
        return x @ A @ B

    x2d = x.reshape(M, in_features)

    # Lane-dense output (pad out_features to a multiple of 128 with zero
    # columns of B -> unmasked vst) only when the output is narrow enough
    # that masked stores cost more than the post-call column-slice copy.
    pad_cols = (-out_features) % 128
    use_pad = pad_cols != 0 and out_features < 512
    out_p = out_features + pad_cols if use_pad else out_features
    B_p = jnp.pad(B, ((0, 0), (0, pad_cols))) if use_pad else B

    # Generation-aware VMEM budget: never above physical capacity
    # (v7x: 64 MiB/TC, v5e/v6e: 128 MiB), with headroom for Mosaic internals.
    vmem_cap = _vmem_capacity_bytes()
    vmem_limit = max(min(vmem_cap - (12 << 20), 100 << 20), 32 << 20)
    tile_budget = max(vmem_limit - (8 << 20), 16 << 20)

    sublane = _min_sublanes(x.dtype)
    tm_auto, tn_auto = _derive_tiles(M, in_features, out_p, rank, itemsize,
                                     sublane, tile_budget)

    if tn is None:
        tn = tn_auto
    elif out_p <= 128:
        tn = out_p
    else:
        tn_cap = out_p if out_p % 128 == 0 else max(128, (out_p // 128) * 128)
        tn = min(max(128, _round_up(tn, 128)), tn_cap)

    if tm is None:
        tm = tm_auto
        # >= 2 M tiles for non-tiny M: keeps both v7x TensorCores busy and
        # lets the x / out DMAs pipeline against compute.
        if _cdiv(M, tm) == 1 and M >= 512:
            tm = _round_up(_cdiv(M, 2), sublane)
    else:
        tm = max(sublane, min(_round_up(tm, sublane), _round_up(M, sublane)))
    # A block whose second-minor dim equals the (possibly unaligned) array dim
    # is always legal; prefer that over a single oversized block for small M.
    if tm >= M:
        tm = M

    grid = (_cdiv(M, tm), _cdiv(out_p, tn))
    b_resident = grid[1] == 1

    flops = 2 * M * rank * (in_features + out_p)
    bytes_accessed = itemsize * (M * in_features + in_features * rank
                                 + grid[0] * rank * out_p + M * out_p)

    call_kwargs = dict(
        tm=tm, tn=tn, grid=grid, out_p=out_p, in_features=in_features,
        rank=rank, out_dtype=x.dtype, vmem_limit=vmem_limit, flops=flops,
        bytes_accessed=bytes_accessed, b_resident=b_resident)

    if hasattr(pl, "Buffered"):
        try:
            out2d = _lora_pallas(x2d, A, B_p, single_buffer_resident=True,
                                 **call_kwargs)
        except Exception:
            out2d = _lora_pallas(x2d, A, B_p, single_buffer_resident=False,
                                 **call_kwargs)
    else:
        out2d = _lora_pallas(x2d, A, B_p, single_buffer_resident=False,
                             **call_kwargs)

    if use_pad:
        out2d = out2d[:, :out_features]
    return out2d.reshape(*lead_shape, out_features)


if __name__ == "__main__":
    key = jax.random.PRNGKey(0)
    kx0, ka, kb, kx1, kx2 = jax.random.split(key, 5)

    # Small shapes consistent with LoRA on a [batch, seq, hidden] activation.
    # The default heuristic would route shapes this small to the XLA fallback,
    # so the Pallas path is forced with use_pallas=True.
    batch, seq = 2, 8
    in_features, out_features, rank = 32, 32, 8

    x = jax.random.normal(kx0, (batch, seq, in_features), dtype=jnp.float32)
    # Matches torch init: A = randn(in_features, rank) * 0.02, B = zeros.
    A = jax.random.normal(ka, (in_features, rank), dtype=jnp.float32) * 0.02
    B = jnp.zeros((rank, out_features), dtype=jnp.float32)

    out = jax.block_until_ready(lora_forward(x, A, B, use_pallas=True))
    ref = x @ A @ B
    assert out.shape == (batch, seq, out_features)
    assert jnp.allclose(out, ref, atol=1e-5), "mismatch (zero B)"

    # Non-zero B (LoRA only initializes B to zeros) + ragged M (not a multiple
    # of the sublane tile) -> exercises boundary-block clipping, no padding.
    B2 = jax.random.normal(kb, (rank, out_features), dtype=jnp.float32)
    x1 = jax.random.normal(kx1, (3, 5, in_features), dtype=jnp.float32)
    out1 = jax.block_until_ready(lora_forward(x1, A, B2, use_pallas=True))
    assert jnp.allclose(out1, x1 @ A @ B2, atol=1e-4), "mismatch (ragged M)"

    # Output-column-tiled path (grid_n > 1): forces tn=128 over a padded
    # 384-wide output, grid_m > 1, and reuse of the cached x@A intermediate.
    in2, out2, r2 = 64, 300, 8
    A2 = jax.random.normal(ka, (in2, r2), dtype=jnp.float32) * 0.02
    B3 = jax.random.normal(kb, (r2, out2), dtype=jnp.float32)
    x2 = jax.random.normal(kx2, (2, 20, in2), dtype=jnp.float32)
    outn = jax.block_until_ready(
        lora_forward(x2, A2, B3, tm=16, tn=128, use_pallas=True))
    assert jnp.allclose(outn, x2 @ A2 @ B3, atol=1e-4), "mismatch (N-tiled)"

    # bf16 path: 16-sublane tiles, halved HBM traffic (recommended on
    # v5e/v6e/v7x); intermediate is downcast to bf16 between the two matmuls.
    xb = jax.random.normal(kx1, (4, 40, 128), dtype=jnp.bfloat16)
    Ab = (jax.random.normal(ka, (128, 16), dtype=jnp.float32) * 0.02
          ).astype(jnp.bfloat16)
    Bb = jax.random.normal(kb, (16, 192), dtype=jnp.float32).astype(jnp.bfloat16)
    outb = jax.block_until_ready(lora_forward(xb, Ab, Bb, use_pallas=True))
    xa_ref = (xb.astype(jnp.float32) @ Ab.astype(jnp.float32)).astype(jnp.bfloat16)
    refb = xa_ref.astype(jnp.float32) @ Bb.astype(jnp.float32)
    assert jnp.allclose(outb.astype(jnp.float32), refb,
                        atol=5e-2, rtol=5e-2), "mismatch (bf16)"

    # Default heuristic on tiny shapes -> XLA fallback, same semantics.
    out_fb = jax.block_until_ready(lora_forward(x, A, B2))
    assert jnp.allclose(out_fb, x @ A @ B2, atol=1e-5), "mismatch (fallback)"

    print("KERNEL_OK")
</pallas_src>

<mosaic_0001>
module attributes {stable_mosaic.version = 11 : i64} {
  func.func @lora_kernel(%arg0: i32, %arg1: i32, %arg2: memref<16x32xf32, #tpu.memory_space<vmem>>, %arg3: memref<32x8xf32, #tpu.memory_space<vmem>>, %arg4: memref<8x128xf32, #tpu.memory_space<vmem>>, %arg5: memref<16x128xf32, #tpu.memory_space<vmem>>, %arg6: memref<16x8xf32, #tpu.memory_space<vmem>>) attributes {dimension_semantics = [#tpu.dimension_semantics<parallel>, #tpu.dimension_semantics<arbitrary>], iteration_bounds = array<i64: 1, 1>, scalar_prefetch = 0 : i64, scratch_operands = 1 : i64, tpu.core_type = #tpu.core_type<tc>, window_params = [{transform_indices = @transform_0, window_bounds = array<i64: 16, 32>}, {pipeline_mode = #tpu.pipeline_mode<synchronous>, transform_indices = @transform_1, window_bounds = array<i64: 32, 8>}, {pipeline_mode = #tpu.pipeline_mode<synchronous>, transform_indices = @transform_2, window_bounds = array<i64: 8, 128>}, {transform_indices = @transform_3, window_bounds = array<i64: 16, 128>}]} {
    %c0_i32 = arith.constant 0 : i32
    %0 = arith.cmpi eq, %arg1, %c0_i32 : i32
    %1 = arith.extui %0 : i1 to i32
    %c0_i32_0 = arith.constant 0 : i32
    %2 = arith.cmpi ne, %1, %c0_i32_0 : i32
    scf.if %2 {
      %c0_6 = arith.constant 0 : index
      %c0_7 = arith.constant 0 : index
      %7 = vector.load %arg2[%c0_6, %c0_7] : memref<16x32xf32, #tpu.memory_space<vmem>>, vector<16x32xf32>
      %c0_8 = arith.constant 0 : index
      %c0_9 = arith.constant 0 : index
      %8 = vector.load %arg3[%c0_8, %c0_9] : memref<32x8xf32, #tpu.memory_space<vmem>>, vector<32x8xf32>
      %cst_10 = arith.constant dense<0.000000e+00> : vector<16x8xf32>
      %9 = tpu.matmul %7, %8, %cst_10 {dimension_numbers = #tpu.dot_dimension_numbers<[1], [0], [0], [1], [0, 0, 1, 1], [], []>} : vector<16x32xf32>, vector<32x8xf32>, vector<16x8xf32> -> vector<16x8xf32>
      %c0_11 = arith.constant 0 : index
      %c0_12 = arith.constant 0 : index
      %10 = vector.load %arg6[%c0_11, %c0_12] : memref<16x8xf32, #tpu.memory_space<vmem>>, vector<16x8xf32>
      tpu.vector_store %arg6[%c0_11, %c0_12], %9 {strides = array<i32>} : memref<16x8xf32, #tpu.memory_space<vmem>>, vector<16x8xf32>,
    } else {
    }
    %c0 = arith.constant 0 : index
    %c0_1 = arith.constant 0 : index
    %3 = vector.load %arg6[%c0, %c0_1] : memref<16x8xf32, #tpu.memory_space<vmem>>, vector<16x8xf32>
    %c0_2 = arith.constant 0 : index
    %c0_3 = arith.constant 0 : index
    %4 = vector.load %arg4[%c0_2, %c0_3] : memref<8x128xf32, #tpu.memory_space<vmem>>, vector<8x128xf32>
    %cst = arith.constant dense<0.000000e+00> : vector<16x128xf32>
    %5 = tpu.matmul %3, %4, %cst {dimension_numbers = #tpu.dot_dimension_numbers<[1], [0], [0], [1], [0, 0, 1, 1], [], []>} : vector<16x8xf32>, vector<8x128xf32>, vector<16x128xf32> -> vector<16x128xf32>
    %c0_4 = arith.constant 0 : index
    %c0_5 = arith.constant 0 : index
    %6 = vector.load %arg5[%c0_4, %c0_5] : memref<16x128xf32, #tpu.memory_space<vmem>>, vector<16x128xf32>
    tpu.vector_store %arg5[%c0_4, %c0_5], %5 {strides = array<i32>} : memref<16x128xf32, #tpu.memory_space<vmem>>, vector<16x128xf32>,
    return
  }
  func.func @transform_0(%arg0: i32, %arg1: i32) -> (i32, i32) {
    %c0_i32 = arith.constant 0 : i32
    %c0_i32_0 = arith.constant 0 : i32
    return %arg0, %c0_i32 : i32, i32
  }
  func.func @transform_1(%arg0: i32, %arg1: i32) -> (i32, i32) {
    %c0_i32 = arith.constant 0 : i32
    %c0_i32_0 = arith.constant 0 : i32
    %c0_i32_1 = arith.constant 0 : i32
    return %c0_i32, %c0_i32_0 : i32, i32
  }
  func.func @transform_2(%arg0: i32, %arg1: i32) -> (i32, i32) {
    %c0_i32 = arith.constant 0 : i32
    %c0_i32_0 = arith.constant 0 : i32
    %c0_i32_1 = arith.constant 0 : i32
    return %c0_i32, %c0_i32_0 : i32, i32
  }
  func.func @transform_3(%arg0: i32, %arg1: i32) -> (i32, i32) {
    %c0_i32 = arith.constant 0 : i32
    return %arg0, %arg1 : i32, i32
  }
}

module attributes {stable_mosaic.version = 11 : i64} {
  func.func @lora_kernel(%arg0: i32, %arg1: i32, %arg2: memref<16x32xf32, #tpu.memory_space<vmem>>, %arg3: memref<32x8xf32, #tpu.memory_space<vmem>>, %arg4: memref<8x128xf32, #tpu.memory_space<vmem>>, %arg5: memref<16x128xf32, #tpu.memory_space<vmem>>, %arg6: memref<16x8xf32, #tpu.memory_space<vmem>>) attributes {dimension_semantics = [#tpu.dimension_semantics<parallel>, #tpu.dimension_semantics<arbitrary>], iteration_bounds = array<i64: 1, 1>, scalar_prefetch = 0 : i64, scratch_operands = 1 : i64, tpu.core_type = #tpu.core_type<tc>, window_params = [{transform_indices = @transform_0, window_bounds = array<i64: 16, 32>}, {pipeline_mode = #tpu.pipeline_mode<synchronous>, transform_indices = @transform_1, window_bounds = array<i64: 32, 8>}, {pipeline_mode = #tpu.pipeline_mode<synchronous>, transform_indices = @transform_2, window_bounds = array<i64: 8, 128>}, {transform_indices = @transform_3, window_bounds = array<i64: 16, 128>}]} {
    %c0_i32 = arith.constant 0 : i32
    %0 = arith.cmpi eq, %arg1, %c0_i32 : i32
    %1 = arith.extui %0 : i1 to i32
    %c0_i32_0 = arith.constant 0 : i32
    %2 = arith.cmpi ne, %1, %c0_i32_0 : i32
    scf.if %2 {
      %c0_6 = arith.constant 0 : index
      %c0_7 = arith.constant 0 : index
      %7 = vector.load %arg2[%c0_6, %c0_7] : memref<16x32xf32, #tpu.memory_space<vmem>>, vector<16x32xf32>
      %c0_8 = arith.constant 0 : index
      %c0_9 = arith.constant 0 : index
      %8 = vector.load %arg3[%c0_8, %c0_9] : memref<32x8xf32, #tpu.memory_space<vmem>>, vector<32x8xf32>
      %cst_10 = arith.constant dense<0.000000e+00> : vector<16x8xf32>
      %9 = tpu.matmul %7, %8, %cst_10 {dimension_numbers = #tpu.dot_dimension_numbers<[1], [0], [0], [1], [0, 0, 1, 1], [], []>} : vector<16x32xf32>, vector<32x8xf32>, vector<16x8xf32> -> vector<16x8xf32>
      %c0_11 = arith.constant 0 : index
      %c0_12 = arith.constant 0 : index
      %10 = vector.load %arg6[%c0_11, %c0_12] : memref<16x8xf32, #tpu.memory_space<vmem>>, vector<16x8xf32>
      tpu.vector_store %arg6[%c0_11, %c0_12], %9 {strides = array<i32>} : memref<16x8xf32, #tpu.memory_space<vmem>>, vector<16x8xf32>,
    } else {
    }
    %c0 = arith.constant 0 : index
    %c0_1 = arith.constant 0 : index
    %3 = vector.load %arg6[%c0, %c0_1] : memref<16x8xf32, #tpu.memory_space<vmem>>, vector<16x8xf32>
    %c0_2 = arith.constant 0 : index
    %c0_3 = arith.constant 0 : index
    %4 = vector.load %arg4[%c0_2, %c0_3] : memref<8x128xf32, #tpu.memory_space<vmem>>, vector<8x128xf32>
    %cst = arith.constant dense<0.000000e+00> : vector<16x128xf32>
    %5 = tpu.matmul %3, %4, %cst {dimension_numbers = #tpu.dot_dimension_numbers<[1], [0], [0], [1], [0, 0, 1, 1], [], []>} : vector<16x8xf32>, vector<8x128xf32>, vector<16x128xf32> -> vector<16x128xf32>
    %c0_4 = arith.constant 0 : index
    %c0_5 = arith.constant 0 : index
    %6 = vector.load %arg5[%c0_4, %c0_5] : memref<16x128xf32, #tpu.memory_space<vmem>>, vector<16x128xf32>
    tpu.vector_store %arg5[%c0_4, %c0_5], %5 {strides = array<i32>} : memref<16x128xf32, #tpu.memory_space<vmem>>, vector<16x128xf32>,
    return
  }
  func.func @transform_0(%arg0: i32, %arg1: i32) -> (i32, i32) {
    %c0_i32 = arith.constant 0 : i32
    %c0_i32_0 = arith.constant 0 : i32
    return %arg0, %c0_i32 : i32, i32
  }
  func.func @transform_1(%arg0: i32, %arg1: i32) -> (i32, i32) {
    %c0_i32 = arith.constant 0 : i32
    %c0_i32_0 = arith.constant 0 : i32
    %c0_i32_1 = arith.constant 0 : i32
    return %c0_i32, %c0_i32_0 : i32, i32
  }
  func.func @transform_2(%arg0: i32, %arg1: i32) -> (i32, i32) {
    %c0_i32 = arith.constant 0 : i32
    %c0_i32_0 = arith.constant 0 : i32
    %c0_i32_1 = arith.constant 0 : i32
    return %c0_i32, %c0_i32_0 : i32, i32
  }
  func.func @transform_3(%arg0: i32, %arg1: i32) -> (i32, i32) {
    %c0_i32 = arith.constant 0 : i32
    return %arg0, %arg1 : i32, i32
  }
}

</mosaic_0001>

<bundles_post_ra>
// kernel: tpu_custom_call.1
= control target key start
LH: loop header
LB: loop body
LE: loop exit
PB: predicated region body
PF: predicated region fallthrough
CT: control target
= control target key end

     0   :  { %vm25_vm0 = vcmask 261120   ;;  %s333_s0 = inlined_call_operand.vmem [shape: f32[16,32], index: 0, kind: input, shape index: {}]   ;;  %s334_s1 = inlined_call_operand.vmem [shape: f32[32,8], index: 1, kind: input, shape index: {}]   ;;  %s335_s2 = inlined_call_operand.vmem [shape: f32[8,128], index: 2, kind: input, shape index: {}]   ;;  %s336_s3 = inlined_call_operand.hbm [shape: f32[16,128], index: 3, kind: output, shape index: {}]  }
   0x1   :  { %v21_v0 = vld [vmem:[%s334_s1] sm:$0xff]  ;;  %v22_v1 = vld [vmem:[%s334_s1 + $0x8] sm:$0xff]  ;;  %v23_v2 = vld [vmem:[%s334_s1 + $0x10] sm:$0xff] }
   0x2   :  { %v242_v3 = vpack.c.bf16 %v22_v1, %v21_v0  ;;  %v24_v4 = vld [vmem:[%s334_s1 + $0x18] sm:$0xff]  ;;  %v19_v5 = vld [vmem:[%s333_s0] sm:$0xff] }
   0x3   :  { %v246_v6 = vpack.c.bf16 %v24_v4, %v23_v2  ;;  %234 = vmatprep.mubr.msk.f32.mxu0 %vm25_vm0, %v19_v5 }
   0x4   :  { %8 = vsyncpa [#allocation4], 0  ;;  %243 = vmatprep.subr.bf16.mxu0 %v242_v3  ;;  %v20_v7 = vld [vmem:[%s333_s0 + $0x8] sm:$0xff]  ;;  %v112_v8 = vld [vmem:[%s335_s2] sm:$0xff]  ;;  %vm107_vm1 = vcmask 64512   ;;  %s277_s1 = smov [#allocation3]  }
   0x5   :  { %245 = vmatpush3.bf16.msra.mxu0 %v242_v3  ;;  %237 = vmatprep.subr.mxu1 %v112_v8  ;;  %s202_s26 = sshll.u32 %s277_s1, 4  ;;  %s203_s26 = int_to_ptr.vmem [resolvable:$true] %s202_s26 }
   0x6   :  { %247 = vmatprep.subr.bf16.mxu0 %v246_v6  ;;  %238 = vmatpush3.msra.mxu1 %v112_v8  ;;  %s253_s0 = scalar_lea.vmem %s203_s26, 256  ;;  %p258_p1 = scmp.lt.s32.totalorder %s203_s26, %s203_s26 }
   0x7   :  { %p254_p0 = scmp.ne.s32.totalorder %s203_s26, %s253_s0  ;;  %p259_p2 = scmp.lt.s32.totalorder %s253_s0, %s253_s0 }
   0x9   :  { %249 = vmatpush3.bf16.msra.mxu0 %v246_v6  ;;  %p260_p3 = por %p259_p2, %p258_p1 }
   0xb   :  { %p261_p4 = pnand %p260_p3, %p254_p0 }
   0xc   :  { %235 = vmatmul.mubr.msk.f32.vlgmr.msra.gmra.mrb[0].mxu0 %vm25_vm0, %v20_v7 }
  0xdf   :  { %v236_v9 = vpop.f32.mrb[0].mxu0 }
  0xe0   :  { %109 = vst.msk [vmem:[#allocation2 + $0x8] sm:$0xff] %vm107_vm1, %v236_v9  ;;  %v98_v10 = vpop.f32.mrb[1].mxu0 }
  0xe1   :  { %108 = vst.msk [vmem:[#allocation2] sm:$0xff] %vm107_vm1, %v98_v10 }
  0xe7   :  { %v111_v12 = vld [vmem:[#allocation2 + $0x8] sm:$0xff] }
  0xe8   :  { %v110_v11 = vld [vmem:[#allocation2] sm:$0xff] }
  0xe9   :  { %239 = vmatprep.mubr.msk.f32.mxu1 %vm107_vm1, %v110_v11 }
  0xea   :  { %240 = vmatmul.mubr.msk.f32.vlgmr.msra.gmra.mrb[0].mxu1 %vm107_vm1, %v111_v12 }
 0x1bd   :  { %v241_v13 = vpop.f32.mrb[0].mxu1 }
 0x1be   :  { %196 = vst [vmem:[#allocation3 + $0x8] sm:$0xff] %v241_v13  ;;  %v186_v14 = vpop.f32.mrb[1].mxu1 }
 0x1bf   :  { %195 = vst [vmem:[#allocation3] sm:$0xff] %v186_v14 }
 0x1c0   :  { %264 = shalt.err (!%p261_p4)
}
 0x1c1   :  { %s265_s28 = scalar_lea.hbm %s336_s3, 256 }
 0x1c2   :  { %p266_p5 = scmp.ne.s32.totalorder %s336_s3, %s265_s28  ;;  %p269_p6 = scmp.lt.u32.totalorder %s265_s28, %s336_s3 }
 0x1c4   :  { %p271_p7 = pnand %p269_p6, %p266_p5 }
 0x1c6   :  { %274 = shalt.err (!%p271_p7)
}
 0x1c7   :  { %s278_s6 = smov 128   ;;  %s279_s7 = smov 8  }
 0x1c8   :  { %208 = dma.vmem_to_hbm [thread:$0]  %s203_s26, 256, %s336_s3, [#allocation4], %s278_s6, %s278_s6, %s279_s7  }
 0x1c9   :  { %275 = dma.done.wait [#allocation4], 256  }
 0x1ca   :  { %276 = vsyncadd [#allocation4], 4294967040 }
 0x1cb   :  { %212 = vsyncpa [#allocation4], 1 }

// kernel: tpu_custom_call.1
= control target key start
LH: loop header
LB: loop body
LE: loop exit
PB: predicated region body
PF: predicated region fallthrough
CT: control target
= control target key end

     0   :  { %vm25_vm0 = vcmask 261120   ;;  %s333_s0 = inlined_call_operand.vmem [shape: f32[16,32], index: 0, kind: input, shape index: {}]   ;;  %s334_s1 = inlined_call_operand.vmem [shape: f32[32,8], index: 1, kind: input, shape index: {}]   ;;  %s335_s2 = inlined_call_operand.vmem [shape: f32[8,128], index: 2, kind: input, shape index: {}]   ;;  %s336_s3 = inlined_call_operand.hbm [shape: f32[16,128], index: 3, kind: output, shape index: {}]  }
   0x1   :  { %v21_v0 = vld [vmem:[%s334_s1] sm:$0xff]  ;;  %v22_v1 = vld [vmem:[%s334_s1 + $0x8] sm:$0xff]  ;;  %v23_v2 = vld [vmem:[%s334_s1 + $0x10] sm:$0xff] }
   0x2   :  { %v242_v3 = vpack.c.bf16 %v22_v1, %v21_v0  ;;  %v24_v4 = vld [vmem:[%s334_s1 + $0x18] sm:$0xff]  ;;  %v19_v5 = vld [vmem:[%s333_s0] sm:$0xff] }
   0x3   :  { %v246_v6 = vpack.c.bf16 %v24_v4, %v23_v2  ;;  %234 = vmatprep.mubr.msk.f32.mxu0 %vm25_vm0, %v19_v5 }
   0x4   :  { %8 = vsyncpa [#allocation4], 0  ;;  %243 = vmatprep.subr.bf16.mxu0 %v242_v3  ;;  %v20_v7 = vld [vmem:[%s333_s0 + $0x8] sm:$0xff]  ;;  %v112_v8 = vld [vmem:[%s335_s2] sm:$0xff]  ;;  %vm107_vm1 = vcmask 64512   ;;  %s277_s1 = smov [#allocation3]  }
   0x5   :  { %245 = vmatpush3.bf16.msra.mxu0 %v242_v3  ;;  %237 = vmatprep.subr.mxu1 %v112_v8  ;;  %s202_s26 = sshll.u32 %s277_s1, 4  ;;  %s203_s26 = int_to_ptr.vmem [resolvable:$true] %s202_s26 }
   0x6   :  { %247 = vmatprep.subr.bf16.mxu0 %v246_v6  ;;  %238 = vmatpush3.msra.mxu1 %v112_v8  ;;  %s253_s0 = scalar_lea.vmem %s203_s26, 256  ;;  %p258_p1 = scmp.lt.s32.totalorder %s203_s26, %s203_s26 }
   0x7   :  { %p254_p0 = scmp.ne.s32.totalorder %s203_s26, %s253_s0  ;;  %p259_p2 = scmp.lt.s32.totalorder %s253_s0, %s253_s0 }
   0x9   :  { %249 = vmatpush3.bf16.msra.mxu0 %v246_v6  ;;  %p260_p3 = por %p259_p2, %p258_p1 }
   0xb   :  { %p261_p4 = pnand %p260_p3, %p254_p0 }
   0xc   :  { %235 = vmatmul.mubr.msk.f32.vlgmr.msra.gmra.mrb[0].mxu0 %vm25_vm0, %v20_v7 }
  0xdf   :  { %v236_v9 = vpop.f32.mrb[0].mxu0 }
  0xe0   :  { %109 = vst.msk [vmem:[#allocation2 + $0x8] sm:$0xff] %vm107_vm1, %v236_v9  ;;  %v98_v10 = vpop.f32.mrb[1].mxu0 }
  0xe1   :  { %108 = vst.msk [vmem:[#allocation2] sm:$0xff] %vm107_vm1, %v98_v10 }
  0xe7   :  { %v111_v12 = vld [vmem:[#allocation2 + $0x8] sm:$0xff] }
  0xe8   :  { %v110_v11 = vld [vmem:[#allocation2] sm:$0xff] }
  0xe9   :  { %239 = vmatprep.mubr.msk.f32.mxu1 %vm107_vm1, %v110_v11 }
  0xea   :  { %240 = vmatmul.mubr.msk.f32.vlgmr.msra.gmra.mrb[0].mxu1 %vm107_vm1, %v111_v12 }
 0x1bd   :  { %v241_v13 = vpop.f32.mrb[0].mxu1 }
 0x1be   :  { %196 = vst [vmem:[#allocation3 + $0x8] sm:$0xff] %v241_v13  ;;  %v186_v14 = vpop.f32.mrb[1].mxu1 }
 0x1bf   :  { %195 = vst [vmem:[#allocation3] sm:$0xff] %v186_v14 }
 0x1c0   :  { %264 = shalt.err (!%p261_p4)
}
 0x1c1   :  { %s265_s28 = scalar_lea.hbm %s336_s3, 256 }
 0x1c2   :  { %p266_p5 = scmp.ne.s32.totalorder %s336_s3, %s265_s28  ;;  %p269_p6 = scmp.lt.u32.totalorder %s265_s28, %s336_s3 }
 0x1c4   :  { %p271_p7 = pnand %p269_p6, %p266_p5 }
 0x1c6   :  { %274 = shalt.err (!%p271_p7)
}
 0x1c7   :  { %s278_s6 = smov 128   ;;  %s279_s7 = smov 8  }
 0x1c8   :  { %208 = dma.vmem_to_hbm [thread:$0]  %s203_s26, 256, %s336_s3, [#allocation4], %s278_s6, %s278_s6, %s279_s7  }
 0x1c9   :  { %275 = dma.done.wait [#allocation4], 256  }
 0x1ca   :  { %276 = vsyncadd [#allocation4], 4294967040 }
 0x1cb   :  { %212 = vsyncpa [#allocation4], 1 }

</bundles_post_ra>
